<compile_context>
chip_gen: v5e
topology: v5e:2x2
jax: 0.10.0
libtpu: 0.0.40
codegen_flags: <defaults>
</compile_context>

<pallas_src>
import functools

import jax
import jax.numpy as jnp
from jax.experimental import pallas as pl
from jax.experimental.pallas import tpu as pltpu

N_EMBD = 32
DROPOUT_P = 0.1
TARGET_TILE_M = 2048  # sweep point per review (1024-4096 all fine)


def _round_up(n, m):
    return ((n + m - 1) // m) * m


def _choose_tile_m(M):
    """Pick the token-tile size.

    Small M -> one sublane-aligned tile.  Large M -> up to TARGET_TILE_M rows
    per tile, but capped at ceil(M/2) so there are always >= 2 grid steps and
    v7x's two TensorCores both get work on the "parallel" axis.
    """
    if M <= 1024:
        return _round_up(M, 8)
    half = _round_up((M + 1) // 2, 8)
    return min(TARGET_TILE_M, half)


def _mlp_kernel(seed_ref, x_ref, w1_ref, b1_ref, w2_ref, b2_ref, o_ref,
                *, training: bool, p: float):
    # x_ref:  (TM, D)  f32      w1_ref: (D, H)  bf16    b1_ref: (1, H)  f32
    # w2_ref: (H, D)   bf16     b2_ref: (1, D)  f32     o_ref:  (TM, D) f32
    x = x_ref[...].astype(jnp.bfloat16)                    # cast in-kernel
    h = jnp.dot(x, w1_ref[...], preferred_element_type=jnp.float32)
    h = h + b1_ref[...]                                    # f32 hidden (TM, H)
    y = jnp.dot(h.astype(jnp.bfloat16), w2_ref[...],
                preferred_element_type=jnp.float32)
    y = y + b2_ref[...]                                    # f32 (TM, D)

    if training:
        # In-kernel dropout via the TPU hardware PRNG (distribution-equivalent
        # to torch Dropout, not bit-identical -- different RNG stream).
        scale = 1.0 / (1.0 - p)                            # trace-time constant
        thr = jnp.uint32(min(int(p * float(2 ** 32)), 2 ** 32 - 1))
        # Large odd multiplier avoids (seed, tile) collisions across calls.
        pltpu.prng_seed(seed_ref[0] + pl.program_id(0) * 1000003)
        bits = pltpu.bitcast(pltpu.prng_random_bits(y.shape), jnp.uint32)
        keep = bits >= thr                                 # keep prob = 1 - p
        y = jnp.where(keep, y * scale, jnp.zeros_like(y))

    o_ref[...] = y.astype(o_ref.dtype)


def mlp_forward(x, w1, b1, w2, b2, *, training=False, seed=0, p=DROPOUT_P):
    """x: (B, T, n_embd) f32 -> (B, T, n_embd) f32.  w1:(D,H) b1:(H,) w2:(H,D) b2:(D,)."""
    B, T, D = x.shape
    H = w1.shape[1]
    M = B * T

    tile_m = _choose_tile_m(M)
    n_tiles = pl.cdiv(M, tile_m)
    M_pad = n_tiles * tile_m

    # x passed straight through in f32 (no separate pad/cast HBM pass); only a
    # ragged tail is padded.
    xm = x.reshape(M, D)
    if M_pad != M:
        xm = jnp.pad(xm, ((0, M_pad - M), (0, 0)))

    # Tiny resident operands: bf16 weights for MXU, f32 biases for the epilogue.
    w1b = w1.astype(jnp.bfloat16)
    w2b = w2.astype(jnp.bfloat16)
    b1r = b1.reshape(1, H).astype(jnp.float32)
    b2r = b2.reshape(1, D).astype(jnp.float32)
    seed_arr = jnp.array([seed], dtype=jnp.int32)

    cost = pl.CostEstimate(
        flops=4 * M_pad * D * H,                       # 2 matmuls of 2*M*D*H
        transcendentals=0,
        bytes_accessed=(M_pad * D * 4                  # x in (f32)
                        + M_pad * D * 4                # out (f32)
                        + (D * H + H * D) * 2          # bf16 weights
                        + (H + D) * 4),                # biases
    )

    kernel = functools.partial(_mlp_kernel, training=training, p=p)

    out = pl.pallas_call(
        kernel,
        out_shape=jax.ShapeDtypeStruct((M_pad, D), jnp.float32),
        grid=(n_tiles,),
        in_specs=[
            pl.BlockSpec(memory_space=pltpu.MemorySpace.SMEM),   # seed (scalar)
            pl.BlockSpec((tile_m, D), lambda i: (i, 0)),         # x: streams
            pl.BlockSpec((D, H),      lambda i: (0, 0)),         # W1: resident
            pl.BlockSpec((1, H),      lambda i: (0, 0)),         # b1: resident
            pl.BlockSpec((H, D),      lambda i: (0, 0)),         # W2: resident
            pl.BlockSpec((1, D),      lambda i: (0, 0)),         # b2: resident
        ],
        out_specs=pl.BlockSpec((tile_m, D), lambda i: (i, 0)),   # unpadded out
        compiler_params=pltpu.CompilerParams(
            dimension_semantics=("parallel",),    # v7x: shard tiles over 2 TCs
            vmem_limit_bytes=32 * 1024 * 1024,    # ~2 MiB actually used at TM=2048
        ),
        cost_estimate=cost,
    )(seed_arr, xm, w1b, b1r, w2b, b2r)

    if M_pad != M:
        out = out[:M]
    return out.reshape(B, T, D)


def init_params(key, n_embd=N_EMBD):
    """Deterministic init mimicking nn.Linear (uniform +/- 1/sqrt(fan_in))."""
    h = 4 * n_embd
    k1, k2, k3, k4 = jax.random.split(key, 4)
    lim1 = 1.0 / jnp.sqrt(n_embd)
    lim2 = 1.0 / jnp.sqrt(h)
    # stored as (in, out) so the kernel does plain row-major x @ W
    w1 = jax.random.uniform(k1, (n_embd, h), jnp.float32, -lim1, lim1)
    b1 = jax.random.uniform(k2, (h,), jnp.float32, -lim1, lim1)
    w2 = jax.random.uniform(k3, (h, n_embd), jnp.float32, -lim2, lim2)
    b2 = jax.random.uniform(k4, (n_embd,), jnp.float32, -lim2, lim2)
    return w1, b1, w2, b2


if __name__ == "__main__":
    key = jax.random.PRNGKey(0)
    kx, kp = jax.random.split(key)

    B, T = 2, 8  # small batch/seq; n_embd = 32 as in the module
    x = jax.random.normal(kx, (B, T, N_EMBD), jnp.float32)
    w1, b1, w2, b2 = init_params(kp)

    # Eval-mode forward (dropout == identity), deterministic.
    y = jax.block_until_ready(mlp_forward(x, w1, b1, w2, b2, training=False))

    # Pure-JAX reference with the same bf16-operand / f32-accumulate numerics.
    xb = x.reshape(-1, N_EMBD).astype(jnp.bfloat16)
    h_ref = jnp.dot(xb, w1.astype(jnp.bfloat16),
                    preferred_element_type=jnp.float32) + b1
    ref = jnp.dot(h_ref.astype(jnp.bfloat16), w2.astype(jnp.bfloat16),
                  preferred_element_type=jnp.float32) + b2
    ref = ref.reshape(B, T, N_EMBD)

    assert y.shape == (B, T, N_EMBD)
    assert jnp.allclose(y, ref, atol=1e-2, rtol=1e-2), \
        float(jnp.max(jnp.abs(y - ref)))

    # Training-mode (in-kernel hardware-PRNG dropout) only on a real TPU
    # backend: prng_seed has no CPU/interpret lowering.
    if jax.default_backend() == "tpu":
        y_tr = jax.block_until_ready(
            mlp_forward(x, w1, b1, w2, b2, training=True, seed=123))
        assert y_tr.shape == (B, T, N_EMBD)

    print("KERNEL_OK")
</pallas_src>

<mosaic_0001>
module attributes {stable_mosaic.version = 11 : i64} {
  func.func @_mlp_kernel(%arg0: i32, %arg1: memref<1xi32, #tpu.memory_space<smem>>, %arg2: memref<16x32xf32, #tpu.memory_space<vmem>>, %arg3: memref<32x128xbf16, #tpu.memory_space<vmem>>, %arg4: memref<1x128xf32, #tpu.memory_space<vmem>>, %arg5: memref<128x32xbf16, #tpu.memory_space<vmem>>, %arg6: memref<1x32xf32, #tpu.memory_space<vmem>>, %arg7: memref<16x32xf32, #tpu.memory_space<vmem>>) attributes {dimension_semantics = [#tpu.dimension_semantics<parallel>], iteration_bounds = array<i64: 1>, scalar_prefetch = 0 : i64, scratch_operands = 0 : i64, tpu.core_type = #tpu.core_type<tc>, window_params = [{transform_indices = @transform_0, window_bounds = array<i64: 1>}, {transform_indices = @transform_1, window_bounds = array<i64: 16, 32>}, {pipeline_mode = #tpu.pipeline_mode<synchronous>, transform_indices = @transform_2, window_bounds = array<i64: 32, 128>}, {pipeline_mode = #tpu.pipeline_mode<synchronous>, transform_indices = @transform_3, window_bounds = array<i64: 1, 128>}, {pipeline_mode = #tpu.pipeline_mode<synchronous>, transform_indices = @transform_4, window_bounds = array<i64: 128, 32>}, {pipeline_mode = #tpu.pipeline_mode<synchronous>, transform_indices = @transform_5, window_bounds = array<i64: 1, 32>}, {transform_indices = @transform_6, window_bounds = array<i64: 16, 32>}]} {
    %c0 = arith.constant 0 : index
    %c0_0 = arith.constant 0 : index
    %0 = vector.load %arg2[%c0, %c0_0] : memref<16x32xf32, #tpu.memory_space<vmem>>, vector<16x32xf32>
    %1 = arith.truncf %0 : vector<16x32xf32> to vector<16x32xbf16>
    %c0_1 = arith.constant 0 : index
    %c0_2 = arith.constant 0 : index
    %2 = vector.load %arg3[%c0_1, %c0_2] : memref<32x128xbf16, #tpu.memory_space<vmem>>, vector<32x128xbf16>
    %cst = arith.constant dense<0.000000e+00> : vector<16x128xf32>
    %3 = tpu.matmul %1, %2, %cst {dimension_numbers = #tpu.dot_dimension_numbers<[1], [0], [0], [1], [0, 0, 1, 1], [], []>} : vector<16x32xbf16>, vector<32x128xbf16>, vector<16x128xf32> -> vector<16x128xf32>
    %c0_3 = arith.constant 0 : index
    %c0_4 = arith.constant 0 : index
    %4 = vector.load %arg4[%c0_3, %c0_4] : memref<1x128xf32, #tpu.memory_space<vmem>>, vector<1x128xf32>
    %5 = vector.broadcast %4 : vector<1x128xf32> to vector<16x128xf32>
    %6 = arith.addf %3, %5 : vector<16x128xf32>
    %7 = arith.truncf %6 : vector<16x128xf32> to vector<16x128xbf16>
    %c0_5 = arith.constant 0 : index
    %c0_6 = arith.constant 0 : index
    %8 = vector.load %arg5[%c0_5, %c0_6] : memref<128x32xbf16, #tpu.memory_space<vmem>>, vector<128x32xbf16>
    %cst_7 = arith.constant dense<0.000000e+00> : vector<16x32xf32>
    %9 = tpu.matmul %7, %8, %cst_7 {dimension_numbers = #tpu.dot_dimension_numbers<[1], [0], [0], [1], [0, 0, 1, 1], [], []>} : vector<16x128xbf16>, vector<128x32xbf16>, vector<16x32xf32> -> vector<16x32xf32>
    %c0_8 = arith.constant 0 : index
    %c0_9 = arith.constant 0 : index
    %10 = vector.load %arg6[%c0_8, %c0_9] : memref<1x32xf32, #tpu.memory_space<vmem>>, vector<1x32xf32>
    %11 = vector.broadcast %10 : vector<1x32xf32> to vector<16x32xf32>
    %12 = arith.addf %9, %11 : vector<16x32xf32>
    %c0_10 = arith.constant 0 : index
    %c0_11 = arith.constant 0 : index
    %13 = vector.load %arg7[%c0_10, %c0_11] : memref<16x32xf32, #tpu.memory_space<vmem>>, vector<16x32xf32>
    tpu.vector_store %arg7[%c0_10, %c0_11], %12 {strides = array<i32>} : memref<16x32xf32, #tpu.memory_space<vmem>>, vector<16x32xf32>,
    return
  }
  func.func @transform_0(%arg0: i32) -> i32 {
    %c0_i32 = arith.constant 0 : i32
    %c0_i32_0 = arith.constant 0 : i32
    return %c0_i32 : i32
  }
  func.func @transform_1(%arg0: i32) -> (i32, i32) {
    %c0_i32 = arith.constant 0 : i32
    %c0_i32_0 = arith.constant 0 : i32
    return %arg0, %c0_i32 : i32, i32
  }
  func.func @transform_2(%arg0: i32) -> (i32, i32) {
    %c0_i32 = arith.constant 0 : i32
    %c0_i32_0 = arith.constant 0 : i32
    %c0_i32_1 = arith.constant 0 : i32
    return %c0_i32, %c0_i32_0 : i32, i32
  }
  func.func @transform_3(%arg0: i32) -> (i32, i32) {
    %c0_i32 = arith.constant 0 : i32
    %c0_i32_0 = arith.constant 0 : i32
    %c0_i32_1 = arith.constant 0 : i32
    return %c0_i32, %c0_i32_0 : i32, i32
  }
  func.func @transform_4(%arg0: i32) -> (i32, i32) {
    %c0_i32 = arith.constant 0 : i32
    %c0_i32_0 = arith.constant 0 : i32
    %c0_i32_1 = arith.constant 0 : i32
    return %c0_i32, %c0_i32_0 : i32, i32
  }
  func.func @transform_5(%arg0: i32) -> (i32, i32) {
    %c0_i32 = arith.constant 0 : i32
    %c0_i32_0 = arith.constant 0 : i32
    %c0_i32_1 = arith.constant 0 : i32
    return %c0_i32, %c0_i32_0 : i32, i32
  }
  func.func @transform_6(%arg0: i32) -> (i32, i32) {
    %c0_i32 = arith.constant 0 : i32
    %c0_i32_0 = arith.constant 0 : i32
    return %arg0, %c0_i32 : i32, i32
  }
}

</mosaic_0001>

<bundles_post_ra>
// kernel: tpu_custom_call.1
= control target key start
LH: loop header
LB: loop body
LE: loop exit
PB: predicated region body
PF: predicated region fallthrough
CT: control target
= control target key end

     0   :  { %s338_s0 = inlined_call_operand.<no memory space> [shape: s32[1], index: 0, kind: input, shape index: {}]   ;;  %s339_s1 = inlined_call_operand.vmem [shape: f32[16,32], index: 1, kind: input, shape index: {}]   ;;  %s340_s2 = inlined_call_operand.vmem [shape: bf16[32,128], index: 2, kind: input, shape index: {}]   ;;  %s341_s3 = inlined_call_operand.vmem [shape: f32[1,128], index: 3, kind: input, shape index: {}]   ;;  %s342_s4 = inlined_call_operand.vmem [shape: bf16[128,32], index: 4, kind: input, shape index: {}]   ;;  %s343_s5 = inlined_call_operand.vmem [shape: f32[1,32], index: 5, kind: input, shape index: {}]   ;;  %s344_s6 = inlined_call_operand.hbm [shape: f32[16,32], index: 6, kind: output, shape index: {}]  }
   0x1   :  { %v212_v0 = vld [vmem:[%s340_s2 + $0x8] sm:$0xff]  ;;  %v220_v1 = vld [vmem:[%s342_s4 + $0x38] sm:$0xff]  ;;  %v211_v2 = vld [vmem:[%s340_s2] sm:$0xff] }
   0x2   :  { %59 = vmatpush.bf16.msra.mxu0 %v212_v0  ;;  %v26_v3 = vld [vmem:[%s339_s1] sm:$0xff]  ;;  %v27_v4 = vld [vmem:[%s339_s1 + $0x8] sm:$0xff]  ;;  %136 = vmatpush.bf16.msra.mxu1 %v220_v1  ;;  %v219_v5 = vld [vmem:[%s342_s4 + $0x30] sm:$0xff] }
   0x3   :  { %12 = vsyncpa [#allocation4], 0  ;;  %v28_v6 = vpack.c.bf16 %v27_v4, %v26_v3  ;;  %vm49_vm0 = vcmask 261120   ;;  %v218_v7 = vld [vmem:[%s342_s4 + $0x28] sm:$0xff]  ;;  %v217_v8 = vld [vmem:[%s342_s4 + $0x20] sm:$0xff]  ;;  %s158_s24 = sshll.u32 %s344_s6, 4  ;;  %s159_s24 = int_to_ptr.hbm [resolvable:$true] %s158_s24 }
   0x4   :  { %v216_v9 = vld [vmem:[%s342_s4 + $0x18] sm:$0xff]  ;;  %v215_v10 = vld [vmem:[%s342_s4 + $0x10] sm:$0xff]  ;;  %v214_v11 = vld [vmem:[%s342_s4 + $0x8] sm:$0xff]  ;;  %s254_s25 = smov 8  }
   0x5   :  { %v213_v12 = vld [vmem:[%s342_s4] sm:$0xff]  ;;  %s252_s4 = smov [#allocation3]  }
   0x6   :  { %60 = vmatpush.bf16.msra.mxu0 %v211_v2  ;;  %137 = vmatpush.bf16.msra.mxu1 %v219_v5  ;;  %v224_v14 = vld [vmem:[%s341_s3] ss:$0 sm:$0xff]  ;;  %s156_s0 = sshll.u32 %s252_s4, 4  ;;  %s253_s3 = smov 128   ;;  %s157_s0 = int_to_ptr.vmem [resolvable:$true] %s156_s0 }
   0x7   :  { %v225_v19 = vld [vmem:[%s343_s5] ss:$0 sm:$0xff] }
   0x9   :  { %178 = vmatmul.msk.bf16.vlgmr.msra.gmra.mxu0 %vm49_vm0, %v28_v6 }
   0xa   :  { %138 = vmatpush.bf16.msra.mxu1 %v218_v7 }
   0xe   :  { %139 = vmatpush.bf16.msra.mxu1 %v217_v8 }
  0x12   :  { %140 = vmatpush.bf16.msra.mxu1 %v216_v9 }
  0x16   :  { %141 = vmatpush.bf16.msra.mxu1 %v215_v10 }
  0x1a   :  { %142 = vmatpush.bf16.msra.mxu1 %v214_v11 }
  0x1e   :  { %143 = vmatpush.bf16.msra.mxu1 %v213_v12 }
  0x86   :  { %v62_v13 = vpop.f32.mrf.mxu0 }
  0x87   :  { %v63_v16 = vadd.f32 %v224_v14, %v62_v13 }
  0x8e   :  { %v64_v15 = vpop.f32.mrf.mxu0 }
  0x8f   :  { %v65_v17 = vadd.f32 %v224_v14, %v64_v15 }
  0x91   :  { %v67_v18 = vpack.c.bf16 %v65_v17, %v63_v16 }
  0x93   :  { %144 = vmatmul.bf16.vlgmr.msra.gmra.mxu1 %v67_v18 }
 0x110   :  { %v145_v20 = vpop.f32.mrf.mxu1 }
 0x111   :  { %v146_v21 = vadd.f32 %v225_v19, %v145_v20 }
 0x113   :  { %150 = vst.msk [vmem:[#allocation3] sm:$0xff] %vm49_vm0, %v146_v21 }
 0x118   :  { %v147_v22 = vpop.f32.mrf.mxu1 }
 0x119   :  { %v148_v23 = vadd.f32 %v225_v19, %v147_v22 }
 0x11b   :  { %151 = vst.msk [vmem:[#allocation3 + $0x8] sm:$0xff] %vm49_vm0, %v148_v23 }
 0x11c   :  { %164 = dma.vmem_to_hbm [thread:$0]  %s157_s0, 256, %s159_s24, [#allocation4], %s253_s3, %s253_s3, %s254_s25  }
 0x11d   :  { %250 = dma.done.wait [#allocation4], 256  }
 0x11e   :  { %251 = vsyncadd [#allocation4], 4294967040 }
 0x11f   :  { %169 = vsyncpa [#allocation4], 1 }

</bundles_post_ra>
